<compile_context>
chip_gen: v7x
topology: tpu7x:2x2x1
jax: 0.10.0
libtpu: 0.0.40
codegen_flags: <defaults>
</compile_context>

<pallas_src>
import jax
import jax.numpy as jnp
from jax.experimental import pallas as pl
from jax.experimental.pallas import tpu as pltpu


def _make_custom_block_kernel(dilation, l_out):
    def kernel(h_ref, x_ref, wv_ref, bv_ref, wd0_ref, wd1_ref,
               hout_ref, out_ref):
        # h_ref:  (Nb, 2C, Lh)  VMEM        x_ref: (Nb, 2C, Lx)  VMEM
        # wv_ref / wd0_ref / wd1_ref: (2C, 2C) VMEM (block-diag packed weights)
        # bv_ref: (2C, 1) VMEM
        h = h_ref[...].astype(jnp.float32)               # (Nb, 2C, Lh)
        x = x_ref[...].astype(jnp.float32)               # (Nb, 2C, Lx)
        wv = wv_ref[...]                                 # (2C, 2C)
        wd0 = wd0_ref[...]                               # (2C, 2C)
        wd1 = wd1_ref[...]                               # (2C, 2C)
        bv = bv_ref[...]                                 # (2C, 1)

        c2 = h.shape[1]
        l_h = h.shape[2]
        tail = l_h - l_out

        # The two taps of the k=2 dilated conv -- sliced once per tile.
        xa = x[:, :, :l_out]                             # tap at t
        xb = x[:, :, dilation:dilation + l_out]          # tap at t + dilation

        # 1x1 conv (v) and 2-tap dilated conv as (Nb, 2C, L) broadcast FMAs.
        hv = jnp.broadcast_to(bv, h.shape).astype(jnp.float32)   # bias init
        xc = jnp.zeros(xa.shape, jnp.float32)
        for c in range(c2):
            hv = hv + wv[:, c:c + 1] * h[:, c:c + 1, :]
            xc = (xc
                  + wd0[:, c:c + 1] * xa[:, c:c + 1, :]
                  + wd1[:, c:c + 1] * xb[:, c:c + 1, :])

        hout_ref[...] = hv.astype(hout_ref.dtype)
        out_ref[...] = jnp.maximum(hv[:, :, tail:] + xc, 0.0).astype(out_ref.dtype)

    return kernel


def custom_block_forward(h, x, wd, wv, bv, *, dilation):
    """h, x: (N, C, L) f32.  wd: (C, C, 2) [no bias], wv: (C, C, 1), bv: (C,)."""
    N, C, Lh = h.shape
    Nx, Cx, Lx = x.shape
    assert (N, C) == (Nx, Cx)
    Lout = Lx - dilation                 # Conv1d(k=2, dilation=d, pad=0) output length
    assert Lout > 0 and Lh >= Lout

    # ---- Pack two batch items into the 8 sublanes: (N, C, L) -> (Np, 2C, L) ----
    pad = N % 2
    if pad:
        h_p = jnp.concatenate([h, jnp.zeros((1, C, Lh), h.dtype)], axis=0)
        x_p = jnp.concatenate([x, jnp.zeros((1, C, Lx), x.dtype)], axis=0)
    else:
        h_p, x_p = h, x
    Npad = N + pad
    Npack = Npad // 2
    C2 = 2 * C
    h_p = h_p.reshape(Npack, C2, Lh)     # contiguous view in NCL layout
    x_p = x_p.reshape(Npack, C2, Lx)

    # ---- Block-diagonal packed weights (same conv applied to each batch half) ----
    def blockdiag(w):
        z = jnp.zeros((C2, C2), jnp.float32)
        z = z.at[:C, :C].set(w)
        z = z.at[C:, C:].set(w)
        return z

    wv2 = blockdiag(wv[:, :, 0].astype(jnp.float32))
    wd0 = blockdiag(wd[:, :, 0].astype(jnp.float32))
    wd1 = blockdiag(wd[:, :, 1].astype(jnp.float32))
    bv2 = jnp.concatenate([bv, bv]).astype(jnp.float32).reshape(C2, 1)

    # ---- Choose packed pairs per grid step (amortize per-step overhead) ----
    # Budget keeps (2 inputs + 2 outputs) x 2 pipeline buffers well inside scoped
    # VMEM on every generation, including v7x's 64 MiB.
    bytes_per_pair = 4 * C2 * (Lh + Lx + Lh + Lout)      # f32 bytes per packed pair
    budget = 6 * 1024 * 1024                             # per buffer set
    nb_cap = max(1, budget // max(bytes_per_pair, 1))
    Nb = 1
    for d in range(1, min(Npack, nb_cap) + 1):
        if Npack % d == 0:
            Nb = d
    grid = (Npack // Nb,)

    kernel = _make_custom_block_kernel(dilation, Lout)

    h_out_p, out_p = pl.pallas_call(
        kernel,
        out_shape=(jax.ShapeDtypeStruct((Npack, C2, Lh), h.dtype),
                   jax.ShapeDtypeStruct((Npack, C2, Lout), x.dtype)),
        grid=grid,
        in_specs=[
            pl.BlockSpec((Nb, C2, Lh), lambda n: (n, 0, 0)),    # h (packed)
            pl.BlockSpec((Nb, C2, Lx), lambda n: (n, 0, 0)),    # x (packed)
            pl.BlockSpec((C2, C2), lambda n: (0, 0)),           # wv  (block-diag)
            pl.BlockSpec((C2, 1), lambda n: (0, 0)),            # bv
            pl.BlockSpec((C2, C2), lambda n: (0, 0)),           # wd tap 0
            pl.BlockSpec((C2, C2), lambda n: (0, 0)),           # wd tap 1
        ],
        out_specs=(
            pl.BlockSpec((Nb, C2, Lh), lambda n: (n, 0, 0)),    # h after v-conv
            pl.BlockSpec((Nb, C2, Lout), lambda n: (n, 0, 0)),  # relu(h_tail + conv(x))
        ),
        compiler_params=pltpu.CompilerParams(
            dimension_semantics=("parallel",)),
    )(h_p, x_p, wv2, bv2, wd0, wd1)

    # ---- Unpack back to (N, C, L) ----
    h_out = h_out_p.reshape(Npad, C, Lh)[:N]
    out = out_p.reshape(Npad, C, Lout)[:N]
    return h_out, out


def reference_forward(h, x, wd, wv, bv, *, dilation):
    """Pure-JAX reference mirroring the PyTorch CustomBlock."""
    Lh = h.shape[2]
    Lx = x.shape[2]
    Lout = Lx - dilation
    xc = (jnp.einsum('oc,ncl->nol', wd[:, :, 0], x[:, :, :Lout])
          + jnp.einsum('oc,ncl->nol', wd[:, :, 1],
                       x[:, :, dilation:dilation + Lout]))
    hv = jnp.einsum('oc,ncl->nol', wv[:, :, 0], h) + bv[None, :, None]
    out = jnp.maximum(hv[:, :, Lh - Lout:] + xc, 0.0)
    return hv, out


if __name__ == "__main__":
    # Small shapes consistent with the module: batch=2, channels=4, length=16.
    N, C, L = 2, 4, 16
    dilation = 2
    key = jax.random.PRNGKey(0)
    kh, kx, kwd, kwv, kbv = jax.random.split(key, 5)

    h = jax.random.normal(kh, (N, C, L), dtype=jnp.float32)
    x = jax.random.normal(kx, (N, C, L), dtype=jnp.float32)

    # Conv1d weight shapes: dilated conv (C, C, 2) no bias; v conv (C, C, 1) + bias.
    bound_d = 1.0 / (C * 2) ** 0.5
    bound_v = 1.0 / C ** 0.5
    wd = jax.random.uniform(kwd, (C, C, 2), minval=-bound_d, maxval=bound_d,
                            dtype=jnp.float32)
    wv = jax.random.uniform(kwv, (C, C, 1), minval=-bound_v, maxval=bound_v,
                            dtype=jnp.float32)
    bv = jax.random.uniform(kbv, (C,), minval=-bound_v, maxval=bound_v,
                            dtype=jnp.float32)

    h_out, out = custom_block_forward(h, x, wd, wv, bv, dilation=dilation)
    h_out = jax.block_until_ready(h_out)
    out = jax.block_until_ready(out)

    h_ref, out_ref = reference_forward(h, x, wd, wv, bv, dilation=dilation)
    assert h_out.shape == (N, C, L)
    assert out.shape == (N, C, L - dilation)
    assert jnp.allclose(h_out, h_ref, atol=1e-5, rtol=1e-5)
    assert jnp.allclose(out, out_ref, atol=1e-5, rtol=1e-5)

    print("KERNEL_OK")
</pallas_src>

<mosaic_0001>
module attributes {stable_mosaic.version = 11 : i64} {
  func.func @kernel(%arg0: i32, %arg1: memref<1x8x16xf32, #tpu.memory_space<vmem>>, %arg2: memref<1x8x16xf32, #tpu.memory_space<vmem>>, %arg3: memref<8x8xf32, #tpu.memory_space<vmem>>, %arg4: memref<8x1xf32, #tpu.memory_space<vmem>>, %arg5: memref<8x8xf32, #tpu.memory_space<vmem>>, %arg6: memref<8x8xf32, #tpu.memory_space<vmem>>, %arg7: memref<1x8x16xf32, #tpu.memory_space<vmem>>, %arg8: memref<1x8x14xf32, #tpu.memory_space<vmem>>) attributes {dimension_semantics = [#tpu.dimension_semantics<parallel>], iteration_bounds = array<i64: 1>, scalar_prefetch = 0 : i64, scratch_operands = 0 : i64, tpu.core_type = #tpu.core_type<tc>, window_params = [{transform_indices = @transform_0, window_bounds = array<i64: 1, 8, 16>}, {transform_indices = @transform_1, window_bounds = array<i64: 1, 8, 16>}, {pipeline_mode = #tpu.pipeline_mode<synchronous>, transform_indices = @transform_2, window_bounds = array<i64: 8, 8>}, {pipeline_mode = #tpu.pipeline_mode<synchronous>, transform_indices = @transform_3, window_bounds = array<i64: 8, 1>}, {pipeline_mode = #tpu.pipeline_mode<synchronous>, transform_indices = @transform_4, window_bounds = array<i64: 8, 8>}, {pipeline_mode = #tpu.pipeline_mode<synchronous>, transform_indices = @transform_5, window_bounds = array<i64: 8, 8>}, {transform_indices = @transform_6, window_bounds = array<i64: 1, 8, 16>}, {transform_indices = @transform_7, window_bounds = array<i64: 1, 8, 14>}]} {
    %c0 = arith.constant 0 : index
    %c0_0 = arith.constant 0 : index
    %c0_1 = arith.constant 0 : index
    %0 = vector.load %arg1[%c0, %c0_0, %c0_1] : memref<1x8x16xf32, #tpu.memory_space<vmem>>, vector<1x8x16xf32>
    %c0_2 = arith.constant 0 : index
    %c0_3 = arith.constant 0 : index
    %c0_4 = arith.constant 0 : index
    %1 = vector.load %arg2[%c0_2, %c0_3, %c0_4] : memref<1x8x16xf32, #tpu.memory_space<vmem>>, vector<1x8x16xf32>
    %c0_5 = arith.constant 0 : index
    %c0_6 = arith.constant 0 : index
    %2 = vector.load %arg3[%c0_5, %c0_6] : memref<8x8xf32, #tpu.memory_space<vmem>>, vector<8x8xf32>
    %c0_7 = arith.constant 0 : index
    %c0_8 = arith.constant 0 : index
    %3 = vector.load %arg5[%c0_7, %c0_8] : memref<8x8xf32, #tpu.memory_space<vmem>>, vector<8x8xf32>
    %c0_9 = arith.constant 0 : index
    %c0_10 = arith.constant 0 : index
    %4 = vector.load %arg6[%c0_9, %c0_10] : memref<8x8xf32, #tpu.memory_space<vmem>>, vector<8x8xf32>
    %c0_11 = arith.constant 0 : index
    %c0_12 = arith.constant 0 : index
    %5 = vector.load %arg4[%c0_11, %c0_12] : memref<8x1xf32, #tpu.memory_space<vmem>>, vector<8x1xf32>
    %6 = vector.extract_strided_slice %1 {offsets = [0, 0, 0], sizes = [1, 8, 14], strides = [1, 1, 1]} : vector<1x8x16xf32> to vector<1x8x14xf32>
    %7 = vector.extract_strided_slice %1 {offsets = [0, 0, 2], sizes = [1, 8, 14], strides = [1, 1, 1]} : vector<1x8x16xf32> to vector<1x8x14xf32>
    %8 = vector.shape_cast %5 : vector<8x1xf32> to vector<1x8x1xf32>
    %9 = vector.broadcast %8 : vector<1x8x1xf32> to vector<1x8x16xf32>
    %cst = arith.constant 0.000000e+00 : f32
    %10 = vector.broadcast %cst : f32 to vector<1x8x14xf32>
    %11 = vector.extract_strided_slice %2 {offsets = [0, 0], sizes = [8, 1], strides = [1, 1]} : vector<8x8xf32> to vector<8x1xf32>
    %12 = vector.extract_strided_slice %0 {offsets = [0, 0, 0], sizes = [1, 1, 16], strides = [1, 1, 1]} : vector<1x8x16xf32> to vector<1x1x16xf32>
    %13 = vector.shape_cast %11 : vector<8x1xf32> to vector<1x8x1xf32>
    %14 = vector.broadcast %13 : vector<1x8x1xf32> to vector<1x8x16xf32>
    %15 = vector.broadcast %12 : vector<1x1x16xf32> to vector<1x8x16xf32>
    %16 = arith.mulf %14, %15 : vector<1x8x16xf32>
    %17 = arith.addf %9, %16 : vector<1x8x16xf32>
    %18 = vector.extract_strided_slice %3 {offsets = [0, 0], sizes = [8, 1], strides = [1, 1]} : vector<8x8xf32> to vector<8x1xf32>
    %19 = vector.extract_strided_slice %6 {offsets = [0, 0, 0], sizes = [1, 1, 14], strides = [1, 1, 1]} : vector<1x8x14xf32> to vector<1x1x14xf32>
    %20 = vector.shape_cast %18 : vector<8x1xf32> to vector<1x8x1xf32>
    %21 = vector.broadcast %20 : vector<1x8x1xf32> to vector<1x8x14xf32>
    %22 = vector.broadcast %19 : vector<1x1x14xf32> to vector<1x8x14xf32>
    %23 = arith.mulf %21, %22 : vector<1x8x14xf32>
    %24 = arith.addf %10, %23 : vector<1x8x14xf32>
    %25 = vector.extract_strided_slice %4 {offsets = [0, 0], sizes = [8, 1], strides = [1, 1]} : vector<8x8xf32> to vector<8x1xf32>
    %26 = vector.extract_strided_slice %7 {offsets = [0, 0, 0], sizes = [1, 1, 14], strides = [1, 1, 1]} : vector<1x8x14xf32> to vector<1x1x14xf32>
    %27 = vector.shape_cast %25 : vector<8x1xf32> to vector<1x8x1xf32>
    %28 = vector.broadcast %27 : vector<1x8x1xf32> to vector<1x8x14xf32>
    %29 = vector.broadcast %26 : vector<1x1x14xf32> to vector<1x8x14xf32>
    %30 = arith.mulf %28, %29 : vector<1x8x14xf32>
    %31 = arith.addf %24, %30 : vector<1x8x14xf32>
    %32 = vector.extract_strided_slice %2 {offsets = [0, 1], sizes = [8, 1], strides = [1, 1]} : vector<8x8xf32> to vector<8x1xf32>
    %33 = vector.extract_strided_slice %0 {offsets = [0, 1, 0], sizes = [1, 1, 16], strides = [1, 1, 1]} : vector<1x8x16xf32> to vector<1x1x16xf32>
    %34 = vector.shape_cast %32 : vector<8x1xf32> to vector<1x8x1xf32>
    %35 = vector.broadcast %34 : vector<1x8x1xf32> to vector<1x8x16xf32>
    %36 = vector.broadcast %33 : vector<1x1x16xf32> to vector<1x8x16xf32>
    %37 = arith.mulf %35, %36 : vector<1x8x16xf32>
    %38 = arith.addf %17, %37 : vector<1x8x16xf32>
    %39 = vector.extract_strided_slice %3 {offsets = [0, 1], sizes = [8, 1], strides = [1, 1]} : vector<8x8xf32> to vector<8x1xf32>
    %40 = vector.extract_strided_slice %6 {offsets = [0, 1, 0], sizes = [1, 1, 14], strides = [1, 1, 1]} : vector<1x8x14xf32> to vector<1x1x14xf32>
    %41 = vector.shape_cast %39 : vector<8x1xf32> to vector<1x8x1xf32>
    %42 = vector.broadcast %41 : vector<1x8x1xf32> to vector<1x8x14xf32>
    %43 = vector.broadcast %40 : vector<1x1x14xf32> to vector<1x8x14xf32>
    %44 = arith.mulf %42, %43 : vector<1x8x14xf32>
    %45 = arith.addf %31, %44 : vector<1x8x14xf32>
    %46 = vector.extract_strided_slice %4 {offsets = [0, 1], sizes = [8, 1], strides = [1, 1]} : vector<8x8xf32> to vector<8x1xf32>
    %47 = vector.extract_strided_slice %7 {offsets = [0, 1, 0], sizes = [1, 1, 14], strides = [1, 1, 1]} : vector<1x8x14xf32> to vector<1x1x14xf32>
    %48 = vector.shape_cast %46 : vector<8x1xf32> to vector<1x8x1xf32>
    %49 = vector.broadcast %48 : vector<1x8x1xf32> to vector<1x8x14xf32>
    %50 = vector.broadcast %47 : vector<1x1x14xf32> to vector<1x8x14xf32>
    %51 = arith.mulf %49, %50 : vector<1x8x14xf32>
    %52 = arith.addf %45, %51 : vector<1x8x14xf32>
    %53 = vector.extract_strided_slice %2 {offsets = [0, 2], sizes = [8, 1], strides = [1, 1]} : vector<8x8xf32> to vector<8x1xf32>
    %54 = vector.extract_strided_slice %0 {offsets = [0, 2, 0], sizes = [1, 1, 16], strides = [1, 1, 1]} : vector<1x8x16xf32> to vector<1x1x16xf32>
    %55 = vector.shape_cast %53 : vector<8x1xf32> to vector<1x8x1xf32>
    %56 = vector.broadcast %55 : vector<1x8x1xf32> to vector<1x8x16xf32>
    %57 = vector.broadcast %54 : vector<1x1x16xf32> to vector<1x8x16xf32>
    %58 = arith.mulf %56, %57 : vector<1x8x16xf32>
    %59 = arith.addf %38, %58 : vector<1x8x16xf32>
    %60 = vector.extract_strided_slice %3 {offsets = [0, 2], sizes = [8, 1], strides = [1, 1]} : vector<8x8xf32> to vector<8x1xf32>
    %61 = vector.extract_strided_slice %6 {offsets = [0, 2, 0], sizes = [1, 1, 14], strides = [1, 1, 1]} : vector<1x8x14xf32> to vector<1x1x14xf32>
    %62 = vector.shape_cast %60 : vector<8x1xf32> to vector<1x8x1xf32>
    %63 = vector.broadcast %62 : vector<1x8x1xf32> to vector<1x8x14xf32>
    %64 = vector.broadcast %61 : vector<1x1x14xf32> to vector<1x8x14xf32>
    %65 = arith.mulf %63, %64 : vector<1x8x14xf32>
    %66 = arith.addf %52, %65 : vector<1x8x14xf32>
    %67 = vector.extract_strided_slice %4 {offsets = [0, 2], sizes = [8, 1], strides = [1, 1]} : vector<8x8xf32> to vector<8x1xf32>
    %68 = vector.extract_strided_slice %7 {offsets = [0, 2, 0], sizes = [1, 1, 14], strides = [1, 1, 1]} : vector<1x8x14xf32> to vector<1x1x14xf32>
    %69 = vector.shape_cast %67 : vector<8x1xf32> to vector<1x8x1xf32>
    %70 = vector.broadcast %69 : vector<1x8x1xf32> to vector<1x8x14xf32>
    %71 = vector.broadcast %68 : vector<1x1x14xf32> to vector<1x8x14xf32>
    %72 = arith.mulf %70, %71 : vector<1x8x14xf32>
    %73 = arith.addf %66, %72 : vector<1x8x14xf32>
    %74 = vector.extract_strided_slice %2 {offsets = [0, 3], sizes = [8, 1], strides = [1, 1]} : vector<8x8xf32> to vector<8x1xf32>
    %75 = vector.extract_strided_slice %0 {offsets = [0, 3, 0], sizes = [1, 1, 16], strides = [1, 1, 1]} : vector<1x8x16xf32> to vector<1x1x16xf32>
    %76 = vector.shape_cast %74 : vector<8x1xf32> to vector<1x8x1xf32>
    %77 = vector.broadcast %76 : vector<1x8x1xf32> to vector<1x8x16xf32>
    %78 = vector.broadcast %75 : vector<1x1x16xf32> to vector<1x8x16xf32>
    %79 = arith.mulf %77, %78 : vector<1x8x16xf32>
    %80 = arith.addf %59, %79 : vector<1x8x16xf32>
    %81 = vector.extract_strided_slice %3 {offsets = [0, 3], sizes = [8, 1], strides = [1, 1]} : vector<8x8xf32> to vector<8x1xf32>
    %82 = vector.extract_strided_slice %6 {offsets = [0, 3, 0], sizes = [1, 1, 14], strides = [1, 1, 1]} : vector<1x8x14xf32> to vector<1x1x14xf32>
    %83 = vector.shape_cast %81 : vector<8x1xf32> to vector<1x8x1xf32>
    %84 = vector.broadcast %83 : vector<1x8x1xf32> to vector<1x8x14xf32>
    %85 = vector.broadcast %82 : vector<1x1x14xf32> to vector<1x8x14xf32>
    %86 = arith.mulf %84, %85 : vector<1x8x14xf32>
    %87 = arith.addf %73, %86 : vector<1x8x14xf32>
    %88 = vector.extract_strided_slice %4 {offsets = [0, 3], sizes = [8, 1], strides = [1, 1]} : vector<8x8xf32> to vector<8x1xf32>
    %89 = vector.extract_strided_slice %7 {offsets = [0, 3, 0], sizes = [1, 1, 14], strides = [1, 1, 1]} : vector<1x8x14xf32> to vector<1x1x14xf32>
    %90 = vector.shape_cast %88 : vector<8x1xf32> to vector<1x8x1xf32>
    %91 = vector.broadcast %90 : vector<1x8x1xf32> to vector<1x8x14xf32>
    %92 = vector.broadcast %89 : vector<1x1x14xf32> to vector<1x8x14xf32>
    %93 = arith.mulf %91, %92 : vector<1x8x14xf32>
    %94 = arith.addf %87, %93 : vector<1x8x14xf32>
    %95 = vector.extract_strided_slice %2 {offsets = [0, 4], sizes = [8, 1], strides = [1, 1]} : vector<8x8xf32> to vector<8x1xf32>
    %96 = vector.extract_strided_slice %0 {offsets = [0, 4, 0], sizes = [1, 1, 16], strides = [1, 1, 1]} : vector<1x8x16xf32> to vector<1x1x16xf32>
    %97 = vector.shape_cast %95 : vector<8x1xf32> to vector<1x8x1xf32>
    %98 = vector.broadcast %97 : vector<1x8x1xf32> to vector<1x8x16xf32>
    %99 = vector.broadcast %96 : vector<1x1x16xf32> to vector<1x8x16xf32>
    %100 = arith.mulf %98, %99 : vector<1x8x16xf32>
    %101 = arith.addf %80, %100 : vector<1x8x16xf32>
    %102 = vector.extract_strided_slice %3 {offsets = [0, 4], sizes = [8, 1], strides = [1, 1]} : vector<8x8xf32> to vector<8x1xf32>
    %103 = vector.extract_strided_slice %6 {offsets = [0, 4, 0], sizes = [1, 1, 14], strides = [1, 1, 1]} : vector<1x8x14xf32> to vector<1x1x14xf32>
    %104 = vector.shape_cast %102 : vector<8x1xf32> to vector<1x8x1xf32>
    %105 = vector.broadcast %104 : vector<1x8x1xf32> to vector<1x8x14xf32>
    %106 = vector.broadcast %103 : vector<1x1x14xf32> to vector<1x8x14xf32>
    %107 = arith.mulf %105, %106 : vector<1x8x14xf32>
    %108 = arith.addf %94, %107 : vector<1x8x14xf32>
    %109 = vector.extract_strided_slice %4 {offsets = [0, 4], sizes = [8, 1], strides = [1, 1]} : vector<8x8xf32> to vector<8x1xf32>
    %110 = vector.extract_strided_slice %7 {offsets = [0, 4, 0], sizes = [1, 1, 14], strides = [1, 1, 1]} : vector<1x8x14xf32> to vector<1x1x14xf32>
    %111 = vector.shape_cast %109 : vector<8x1xf32> to vector<1x8x1xf32>
    %112 = vector.broadcast %111 : vector<1x8x1xf32> to vector<1x8x14xf32>
    %113 = vector.broadcast %110 : vector<1x1x14xf32> to vector<1x8x14xf32>
    %114 = arith.mulf %112, %113 : vector<1x8x14xf32>
    %115 = arith.addf %108, %114 : vector<1x8x14xf32>
    %116 = vector.extract_strided_slice %2 {offsets = [0, 5], sizes = [8, 1], strides = [1, 1]} : vector<8x8xf32> to vector<8x1xf32>
    %117 = vector.extract_strided_slice %0 {offsets = [0, 5, 0], sizes = [1, 1, 16], strides = [1, 1, 1]} : vector<1x8x16xf32> to vector<1x1x16xf32>
    %118 = vector.shape_cast %116 : vector<8x1xf32> to vector<1x8x1xf32>
    %119 = vector.broadcast %118 : vector<1x8x1xf32> to vector<1x8x16xf32>
    %120 = vector.broadcast %117 : vector<1x1x16xf32> to vector<1x8x16xf32>
    %121 = arith.mulf %119, %120 : vector<1x8x16xf32>
    %122 = arith.addf %101, %121 : vector<1x8x16xf32>
    %123 = vector.extract_strided_slice %3 {offsets = [0, 5], sizes = [8, 1], strides = [1, 1]} : vector<8x8xf32> to vector<8x1xf32>
    %124 = vector.extract_strided_slice %6 {offsets = [0, 5, 0], sizes = [1, 1, 14], strides = [1, 1, 1]} : vector<1x8x14xf32> to vector<1x1x14xf32>
    %125 = vector.shape_cast %123 : vector<8x1xf32> to vector<1x8x1xf32>
    %126 = vector.broadcast %125 : vector<1x8x1xf32> to vector<1x8x14xf32>
    %127 = vector.broadcast %124 : vector<1x1x14xf32> to vector<1x8x14xf32>
    %128 = arith.mulf %126, %127 : vector<1x8x14xf32>
    %129 = arith.addf %115, %128 : vector<1x8x14xf32>
    %130 = vector.extract_strided_slice %4 {offsets = [0, 5], sizes = [8, 1], strides = [1, 1]} : vector<8x8xf32> to vector<8x1xf32>
    %131 = vector.extract_strided_slice %7 {offsets = [0, 5, 0], sizes = [1, 1, 14], strides = [1, 1, 1]} : vector<1x8x14xf32> to vector<1x1x14xf32>
    %132 = vector.shape_cast %130 : vector<8x1xf32> to vector<1x8x1xf32>
    %133 = vector.broadcast %132 : vector<1x8x1xf32> to vector<1x8x14xf32>
    %134 = vector.broadcast %131 : vector<1x1x14xf32> to vector<1x8x14xf32>
    %135 = arith.mulf %133, %134 : vector<1x8x14xf32>
    %136 = arith.addf %129, %135 : vector<1x8x14xf32>
    %137 = vector.extract_strided_slice %2 {offsets = [0, 6], sizes = [8, 1], strides = [1, 1]} : vector<8x8xf32> to vector<8x1xf32>
    %138 = vector.extract_strided_slice %0 {offsets = [0, 6, 0], sizes = [1, 1, 16], strides = [1, 1, 1]} : vector<1x8x16xf32> to vector<1x1x16xf32>
    %139 = vector.shape_cast %137 : vector<8x1xf32> to vector<1x8x1xf32>
    %140 = vector.broadcast %139 : vector<1x8x1xf32> to vector<1x8x16xf32>
    %141 = vector.broadcast %138 : vector<1x1x16xf32> to vector<1x8x16xf32>
    %142 = arith.mulf %140, %141 : vector<1x8x16xf32>
    %143 = arith.addf %122, %142 : vector<1x8x16xf32>
    %144 = vector.extract_strided_slice %3 {offsets = [0, 6], sizes = [8, 1], strides = [1, 1]} : vector<8x8xf32> to vector<8x1xf32>
    %145 = vector.extract_strided_slice %6 {offsets = [0, 6, 0], sizes = [1, 1, 14], strides = [1, 1, 1]} : vector<1x8x14xf32> to vector<1x1x14xf32>
    %146 = vector.shape_cast %144 : vector<8x1xf32> to vector<1x8x1xf32>
    %147 = vector.broadcast %146 : vector<1x8x1xf32> to vector<1x8x14xf32>
    %148 = vector.broadcast %145 : vector<1x1x14xf32> to vector<1x8x14xf32>
    %149 = arith.mulf %147, %148 : vector<1x8x14xf32>
    %150 = arith.addf %136, %149 : vector<1x8x14xf32>
    %151 = vector.extract_strided_slice %4 {offsets = [0, 6], sizes = [8, 1], strides = [1, 1]} : vector<8x8xf32> to vector<8x1xf32>
    %152 = vector.extract_strided_slice %7 {offsets = [0, 6, 0], sizes = [1, 1, 14], strides = [1, 1, 1]} : vector<1x8x14xf32> to vector<1x1x14xf32>
    %153 = vector.shape_cast %151 : vector<8x1xf32> to vector<1x8x1xf32>
    %154 = vector.broadcast %153 : vector<1x8x1xf32> to vector<1x8x14xf32>
    %155 = vector.broadcast %152 : vector<1x1x14xf32> to vector<1x8x14xf32>
    %156 = arith.mulf %154, %155 : vector<1x8x14xf32>
    %157 = arith.addf %150, %156 : vector<1x8x14xf32>
    %158 = vector.extract_strided_slice %2 {offsets = [0, 7], sizes = [8, 1], strides = [1, 1]} : vector<8x8xf32> to vector<8x1xf32>
    %159 = vector.extract_strided_slice %0 {offsets = [0, 7, 0], sizes = [1, 1, 16], strides = [1, 1, 1]} : vector<1x8x16xf32> to vector<1x1x16xf32>
    %160 = vector.shape_cast %158 : vector<8x1xf32> to vector<1x8x1xf32>
    %161 = vector.broadcast %160 : vector<1x8x1xf32> to vector<1x8x16xf32>
    %162 = vector.broadcast %159 : vector<1x1x16xf32> to vector<1x8x16xf32>
    %163 = arith.mulf %161, %162 : vector<1x8x16xf32>
    %164 = arith.addf %143, %163 : vector<1x8x16xf32>
    %165 = vector.extract_strided_slice %3 {offsets = [0, 7], sizes = [8, 1], strides = [1, 1]} : vector<8x8xf32> to vector<8x1xf32>
    %166 = vector.extract_strided_slice %6 {offsets = [0, 7, 0], sizes = [1, 1, 14], strides = [1, 1, 1]} : vector<1x8x14xf32> to vector<1x1x14xf32>
    %167 = vector.shape_cast %165 : vector<8x1xf32> to vector<1x8x1xf32>
    %168 = vector.broadcast %167 : vector<1x8x1xf32> to vector<1x8x14xf32>
    %169 = vector.broadcast %166 : vector<1x1x14xf32> to vector<1x8x14xf32>
    %170 = arith.mulf %168, %169 : vector<1x8x14xf32>
    %171 = arith.addf %157, %170 : vector<1x8x14xf32>
    %172 = vector.extract_strided_slice %4 {offsets = [0, 7], sizes = [8, 1], strides = [1, 1]} : vector<8x8xf32> to vector<8x1xf32>
    %173 = vector.extract_strided_slice %7 {offsets = [0, 7, 0], sizes = [1, 1, 14], strides = [1, 1, 1]} : vector<1x8x14xf32> to vector<1x1x14xf32>
    %174 = vector.shape_cast %172 : vector<8x1xf32> to vector<1x8x1xf32>
    %175 = vector.broadcast %174 : vector<1x8x1xf32> to vector<1x8x14xf32>
    %176 = vector.broadcast %173 : vector<1x1x14xf32> to vector<1x8x14xf32>
    %177 = arith.mulf %175, %176 : vector<1x8x14xf32>
    %178 = arith.addf %171, %177 : vector<1x8x14xf32>
    %c0_13 = arith.constant 0 : index
    %c0_14 = arith.constant 0 : index
    %c0_15 = arith.constant 0 : index
    %179 = vector.load %arg7[%c0_13, %c0_14, %c0_15] : memref<1x8x16xf32, #tpu.memory_space<vmem>>, vector<1x8x16xf32>
    tpu.vector_store %arg7[%c0_13, %c0_14, %c0_15], %164 {strides = array<i32>} : memref<1x8x16xf32, #tpu.memory_space<vmem>>, vector<1x8x16xf32>,
    %180 = vector.extract_strided_slice %164 {offsets = [0, 0, 2], sizes = [1, 8, 14], strides = [1, 1, 1]} : vector<1x8x16xf32> to vector<1x8x14xf32>
    %181 = arith.addf %180, %178 : vector<1x8x14xf32>
    %cst_16 = arith.constant 0.000000e+00 : f32
    %182 = vector.broadcast %cst_16 : f32 to vector<1x8x14xf32>
    %183 = arith.maximumf %181, %182 : vector<1x8x14xf32>
    %c0_17 = arith.constant 0 : index
    %c0_18 = arith.constant 0 : index
    %c0_19 = arith.constant 0 : index
    %184 = vector.load %arg8[%c0_17, %c0_18, %c0_19] : memref<1x8x14xf32, #tpu.memory_space<vmem>>, vector<1x8x14xf32>
    tpu.vector_store %arg8[%c0_17, %c0_18, %c0_19], %183 {strides = array<i32>} : memref<1x8x14xf32, #tpu.memory_space<vmem>>, vector<1x8x14xf32>,
    return
  }
  func.func @transform_0(%arg0: i32) -> (i32, i32, i32) {
    %c0_i32 = arith.constant 0 : i32
    %c0_i32_0 = arith.constant 0 : i32
    %c0_i32_1 = arith.constant 0 : i32
    return %arg0, %c0_i32, %c0_i32_0 : i32, i32, i32
  }
  func.func @transform_1(%arg0: i32) -> (i32, i32, i32) {
    %c0_i32 = arith.constant 0 : i32
    %c0_i32_0 = arith.constant 0 : i32
    %c0_i32_1 = arith.constant 0 : i32
    return %arg0, %c0_i32, %c0_i32_0 : i32, i32, i32
  }
  func.func @transform_2(%arg0: i32) -> (i32, i32) {
    %c0_i32 = arith.constant 0 : i32
    %c0_i32_0 = arith.constant 0 : i32
    %c0_i32_1 = arith.constant 0 : i32
    return %c0_i32, %c0_i32_0 : i32, i32
  }
  func.func @transform_3(%arg0: i32) -> (i32, i32) {
    %c0_i32 = arith.constant 0 : i32
    %c0_i32_0 = arith.constant 0 : i32
    %c0_i32_1 = arith.constant 0 : i32
    return %c0_i32, %c0_i32_0 : i32, i32
  }
  func.func @transform_4(%arg0: i32) -> (i32, i32) {
    %c0_i32 = arith.constant 0 : i32
    %c0_i32_0 = arith.constant 0 : i32
    %c0_i32_1 = arith.constant 0 : i32
    return %c0_i32, %c0_i32_0 : i32, i32
  }
  func.func @transform_5(%arg0: i32) -> (i32, i32) {
    %c0_i32 = arith.constant 0 : i32
    %c0_i32_0 = arith.constant 0 : i32
    %c0_i32_1 = arith.constant 0 : i32
    return %c0_i32, %c0_i32_0 : i32, i32
  }
  func.func @transform_6(%arg0: i32) -> (i32, i32, i32) {
    %c0_i32 = arith.constant 0 : i32
    %c0_i32_0 = arith.constant 0 : i32
    %c0_i32_1 = arith.constant 0 : i32
    return %arg0, %c0_i32, %c0_i32_0 : i32, i32, i32
  }
  func.func @transform_7(%arg0: i32) -> (i32, i32, i32) {
    %c0_i32 = arith.constant 0 : i32
    %c0_i32_0 = arith.constant 0 : i32
    %c0_i32_1 = arith.constant 0 : i32
    return %arg0, %c0_i32, %c0_i32_0 : i32, i32, i32
  }
}

</mosaic_0001>

<bundles_post_ra>
// kernel: tpu_custom_call.1
= control target key start
LH: loop header
LB: loop body
LE: loop exit
PB: predicated region body
PF: predicated region fallthrough
CT: control target
= control target key end

     0   :  { %13 = vsyncpa [#allocation3], 0  ;;  %s679_s0 = inlined_call_operand.vmem [shape: f32[1,8,16], index: 0, kind: input, shape index: {}]   ;;  %s680_s1 = inlined_call_operand.hbm [shape: f32[1,8,16], index: 1, kind: input, shape index: {}]   ;;  %s681_s2 = inlined_call_operand.vmem [shape: f32[8,8], index: 2, kind: input, shape index: {}]   ;;  %s682_s3 = inlined_call_operand.vmem [shape: f32[8,1], index: 3, kind: input, shape index: {}]   ;;  %s683_s4 = inlined_call_operand.vmem [shape: f32[8,8], index: 4, kind: input, shape index: {}]   ;;  %s684_s5 = inlined_call_operand.hbm [shape: f32[8,8], index: 5, kind: input, shape index: {}]   ;;  %s685_s6 = inlined_call_operand.hbm [shape: f32[1,8,16], index: 6, kind: output, shape index: {0}]   ;;  %s686_s7 = inlined_call_operand.hbm [shape: f32[1,8,14], index: 7, kind: output, shape index: {1}]  }
   0x1   :  { %14 = vsyncpa [#allocation6], 0 }
   0x2   :  { %15 = vsyncpa [#allocation4], 0 }
   0x3   :  { %16 = vsyncpa [#allocation9], 0  ;;  %s484_s24 = smov [#allocation2]   ;;  %s485_s26 = smov [#allocation5]  }
   0x4   :  { %s25_s25 = sshll.u32 %s484_s24, 4  ;;  %s41_s27 = sshll.u32 %s485_s26, 4  ;;  %s26_s25 = int_to_ptr.vmem [resolvable:$true] %s25_s25  ;;  %s42_s27 = int_to_ptr.vmem [resolvable:$true] %s41_s27 }
   0x5   :  { %s388_s30 = scalar_lea.hbm %s680_s1, 128 }
   0x6   :  { %p389_p0 = scmp.ne.s32.totalorder %s680_s1, %s388_s30  ;;  %p392_p1 = scmp.lt.u32.totalorder %s388_s30, %s680_s1 }
   0x8   :  { %p394_p2 = pnand %p392_p1, %p389_p0 }
   0xa   :  { %397 = shalt.err (!%p394_p2)
}
   0xb   :  { %s398_s12 = scalar_lea.vmem %s26_s25, 128  ;;  %p403_p4 = scmp.lt.s32.totalorder %s26_s25, %s26_s25 }
   0xc   :  { %p399_p3 = scmp.ne.s32.totalorder %s26_s25, %s398_s12  ;;  %p404_p5 = scmp.lt.s32.totalorder %s398_s12, %s398_s12 }
   0xe   :  { %p405_p6 = por %p404_p5, %p403_p4 }
  0x10   :  { %p406_p7 = pnand %p405_p6, %p399_p3 }
  0x12   :  { %409 = shalt.err (!%p406_p7)
}
  0x13   :  { %28 = dma.hbm_to_vmem [thread:$0]  %s680_s1, 128, %s26_s25, [#allocation3]  }
  0x14   :  { %s410_s17 = scalar_lea.hbm %s684_s5, 128 }
  0x15   :  { %p411_p8 = scmp.ne.s32.totalorder %s684_s5, %s410_s17  ;;  %p414_p9 = scmp.lt.u32.totalorder %s410_s17, %s684_s5 }
  0x17   :  { %p416_p10 = pnand %p414_p9, %p411_p8 }
  0x19   :  { %419 = shalt.err (!%p416_p10)
}
  0x1a   :  { %s420_s22 = scalar_lea.vmem %s42_s27, 128  ;;  %p425_p12 = scmp.lt.s32.totalorder %s42_s27, %s42_s27 }
  0x1b   :  { %p421_p11 = scmp.ne.s32.totalorder %s42_s27, %s420_s22  ;;  %p426_p13 = scmp.lt.s32.totalorder %s420_s22, %s420_s22 }
  0x1d   :  { %p427_p0 = por %p426_p13, %p425_p12 }
  0x1f   :  { %p428_p1 = pnand %p427_p0, %p421_p11 }
  0x21   :  { %431 = shalt.err (!%p428_p1)
}
  0x22   :  { %44 = dma.hbm_to_vmem [thread:$0]  %s684_s5, 128, %s42_s27, [#allocation6]  }
  0x23   :  { %476 = dma.done.wait [#allocation3], 128  }
  0x24   :  { %477 = vsyncadd [#allocation3], 4294967168 }
  0x25   :  { %478 = dma.done.wait [#allocation6], 128  }
  0x26   :  { %479 = vsyncadd [#allocation6], 4294967168  ;;  %v486_v0 = vmov 2   ;;  %v487_v1 = vmov 0   ;;  %v55_v2 = vld [vmem:[#allocation5] sm:$0xff]  ;;  %v488_v3 = vmov 3   ;;  %v67_v10 = vlaneseq }
  0x27   :  { %365 = vset.pattern.permute.xlu1 %v486_v0  ;;  %363 = vset.pattern.permute.xlu0 %v487_v1  ;;  %v489_v4 = vmov 1   ;;  %v490_v5 = vmov 4   ;;  %v491_v6 = vmov 5   ;;  %v492_v7 = vmov 6   ;;  %v54_v8 = vld [vmem:[%s683_s4] sm:$0xff]  ;;  %s494_s4 = smov 126  }
  0x28   :  { %146 = vperm.xlu1 %365, %v55_v2   ;;  %86 = vperm.xlu0 %363, %v55_v2   ;;  %v493_v9 = vmov 7   ;;  %v579_v11 = vshrl.u32 %v67_v10, 7  ;;  %v52_v13 = vld [vmem:[#allocation2] sm:$0xff]  ;;  %vm305_vm0 = vcmask 130048  }
  0x29   :  { %v53_v41 = vld [vmem:[%s681_s2] sm:$0xff]  ;;  %s495_s2 = smov 2  }
  0x2a   :  { %v69_v12 = vsub.s32 0, %v579_v11  ;;  %v101_v15 = vsub.s32 1, %v579_v11  ;;  %v131_v19 = vsub.s32 2, %v579_v11  ;;  %v161_v21 = vsub.s32 3, %v579_v11  ;;  %v56_v46 = vld [vmem:[%s682_s3] sm:$0xff] }
  0x2b   :  { %v191_v27 = vsub.s32 4, %v579_v11  ;;  %v251_v28 = vsub.s32 6, %v579_v11  ;;  %v221_v34 = vsub.s32 5, %v579_v11  ;;  %v281_v39 = vsub.s32 7, %v579_v11 }
  0x2c   :  { %366 = vset.pattern.permute.xlu1 %v488_v3  ;;  %364 = vset.pattern.permute.xlu0 %v489_v4  ;;  %v584_v14 = vrot.slane %v52_v13, %v69_v12  ;;  %v112_v20 = vrot.slane %v52_v13, %v101_v15  ;;  %v142_v24 = vrot.slane %v52_v13, %v131_v19 }
  0x2d   :  { %176 = vperm.xlu1 %366, %v55_v2   ;;  %116 = vperm.xlu0 %364, %v55_v2   ;;  %v172_v26 = vrot.slane %v52_v13, %v161_v21  ;;  %v202_v32 = vrot.slane %v52_v13, %v191_v27  ;;  %v605_v33 = vrot.slane %v52_v13, %v251_v28 }
  0x2e   :  { %v232_v38 = vrot.slane %v52_v13, %v221_v34  ;;  %v292_v43 = vrot.slane %v52_v13, %v281_v39 }
  0x31   :  { %367 = vset.pattern.permute.xlu1 %v490_v5  ;;  %368 = vset.pattern.permute.xlu0 %v491_v6 }
  0x32   :  { %206 = vperm.xlu1 %367, %v55_v2   ;;  %236 = vperm.xlu0 %368, %v55_v2  }
  0x36   :  { %369 = vset.pattern.permute.xlu1 %v492_v7  ;;  %371 = vset.pattern.permute.xlu0 %v487_v1 }
  0x37   :  { %266 = vperm.xlu1 %369, %v55_v2   ;;  %75 = vperm.xlu0 %371, %v54_v8  }
  0x3b   :  { %370 = vset.pattern.permute.xlu1 %v493_v9 }
  0x3c   :  { %296 = vperm.xlu1 %370, %v55_v2  }
  0x40   :  { %372 = vset.pattern.permute.xlu1 %v489_v4 }
  0x41   :  { %106 = vperm.xlu1 %372, %v54_v8  }
  0x45   :  { %373 = vset.pattern.permute.xlu1 %v486_v0 }
  0x46   :  { %136 = vperm.xlu1 %373, %v54_v8  }
  0x4a   :  { %374 = vset.pattern.permute.xlu1 %v488_v3 }
  0x4b   :  { %166 = vperm.xlu1 %374, %v54_v8  }
  0x4f   :  { %375 = vset.pattern.permute.xlu1 %v490_v5 }
  0x50   :  { %196 = vperm.xlu1 %375, %v54_v8  }
  0x54   :  { %376 = vset.pattern.permute.xlu1 %v491_v6 }
  0x55   :  { %226 = vperm.xlu1 %376, %v54_v8  }
  0x59   :  { %377 = vset.pattern.permute.xlu1 %v492_v7 }
  0x5a   :  { %256 = vperm.xlu1 %377, %v54_v8  }
  0x5e   :  { %378 = vset.pattern.permute.xlu1 %v493_v9 }
  0x5f   :  { %286 = vperm.xlu1 %378, %v54_v8  }
  0x63   :  { %379 = vset.pattern.permute.xlu1 %v487_v1 }
  0xa7   :  { %v87_v16 = vpop.permute.xlu0 %86  ;;  %v147_v17 = vpop.permute.xlu1 %146 }
  0xa8   :  { %v89_v18 = vmul.f32 %v87_v16, %v584_v14  ;;  %v149_v29 = vmul.f32 %v147_v17, %v142_v24 }
  0xaa   :  { %91 = vrot.lane.b32.xlu0 %v89_v18, %s494_s4 }
  0xac   :  { %v117_v22 = vpop.permute.xlu0 %116  ;;  %v177_v23 = vpop.permute.xlu1 %176 }
  0xad   :  { %v119_v25 = vmul.f32 %v117_v22, %v112_v20  ;;  %v179_v31 = vmul.f32 %v177_v23, %v172_v26 }
  0xaf   :  { %121 = vrot.lane.b32.xlu0 %v119_v25, %s494_s4 }
  0xb1   :  { %v207_v30 = vpop.permute.xlu1 %206  ;;  %v237_v40 = vpop.permute.xlu0 %236 }
  0xb2   :  { %v209_v36 = vmul.f32 %v207_v30, %v202_v32  ;;  %v239_v42 = vmul.f32 %v237_v40, %v232_v38  ;;  %v51_v30 = vld [vmem:[%s679_s0] sm:$0xff]  ;;  %s496_s0 = smov [#allocation7]  }
  0xb3   :  { %151 = vrot.lane.b32.xlu0 %v149_v29, %s494_s4  ;;  %s325_s30 = sshll.u32 %s496_s0, 4  ;;  %s326_s30 = int_to_ptr.vmem [resolvable:$true] %s325_s30 }
  0xb4   :  { %s432_s8 = scalar_lea.vmem %s326_s30, 128  ;;  %p437_p3 = scmp.lt.s32.totalorder %s326_s30, %s326_s30 }
  0xb5   :  { %p433_p2 = scmp.ne.s32.totalorder %s326_s30, %s432_s8  ;;  %p438_p4 = scmp.lt.s32.totalorder %s432_s8, %s432_s8 }
  0xb6   :  { %v267_v35 = vpop.permute.xlu1 %266  ;;  %v76_v50 = vpop.permute.xlu0 %75 }
  0xb7   :  { %v269_v37 = vmul.f32 %v267_v35, %v605_v33  ;;  %181 = vrot.lane.b32.xlu0 %v179_v31, %s494_s4  ;;  %v82_v51 = vmul.f32 %v584_v14, %v76_v50  ;;  %v70_v31 = vrot.slane %v51_v30, %v69_v12  ;;  %v102_v35 = vrot.slane %v51_v30, %v101_v15  ;;  %p439_p5 = por %p438_p4, %p437_p3 }
  0xb8   :  { %v222_v15 = vrot.slane %v51_v30, %v221_v34  ;;  %v252_v50 = vrot.slane %v51_v30, %v251_v28 }
  0xb9   :  { %271 = vrot.lane.b32.xlu1 %v269_v37, %s494_s4  ;;  %p440_p6 = pnand %p439_p5, %p433_p2 }
  0xbb   :  { %211 = vrot.lane.b32.xlu0 %v209_v36, %s494_s4  ;;  %v297_v44 = vpop.permute.xlu1 %296 }
  0xbc   :  { %v299_v45 = vmul.f32 %v297_v44, %v292_v43 }
  0xbd   :  { %64 = vperm.xlu1 %379, %v53_v41  }
  0xbf   :  { %241 = vrot.lane.b32.xlu0 %v239_v42, %s494_s4  ;;  %v132_v42 = vrot.slane %v51_v30, %v131_v19 }
  0xc0   :  { %v107_v47 = vpop.permute.xlu1 %106 }
  0xc1   :  { %380 = vset.pattern.permute.xlu1 %v489_v4  ;;  %v113_v54 = vmul.f32 %v112_v20, %v107_v47 }
  0xc2   :  { %96 = vperm.xlu1 %380, %v53_v41  }
  0xc3   :  { %301 = vrot.lane.b32.xlu0 %v299_v45, %s494_s4 }
  0xc5   :  { %v137_v48 = vpop.permute.xlu1 %136 }
  0xc6   :  { %382 = vset.pattern.permute.xlu1 %v488_v3  ;;  %v143_v59 = vmul.f32 %v142_v24, %v137_v48 }
  0xc7   :  { %156 = vperm.xlu1 %382, %v53_v41   ;;  %59 = vperm.xlu0 %371, %v56_v46  }
  0xca   :  { %v167_v49 = vpop.permute.xlu1 %166 }
  0xcb   :  { %383 = vset.pattern.permute.xlu1 %v490_v5  ;;  %381 = vset.pattern.permute.xlu0 %v486_v0  ;;  %v173_v63 = vmul.f32 %v172_v26, %v167_v49 }
  0xcc   :  { %186 = vperm.xlu1 %383, %v53_v41   ;;  %126 = vperm.xlu0 %381, %v53_v41  }
  0xcf   :  { %v197_v52 = vpop.permute.xlu1 %196 }
  0xd0   :  { %385 = vset.pattern.permute.xlu1 %v492_v7  ;;  %384 = vset.pattern.permute.xlu0 %v491_v6  ;;  %v203_v4 = vmul.f32 %v202_v32, %v197_v52 }
  0xd1   :  { %246 = vperm.xlu1 %385, %v53_v41   ;;  %216 = vperm.xlu0 %384, %v53_v41  }
  0xd4   :  { %v227_v58 = vpop.permute.xlu1 %226 }
  0xd5   :  { %386 = vset.pattern.permute.xlu1 %v493_v9  ;;  %387 = vset.pattern.permute.xlu0 %v493_v9  ;;  %v233_v9 = vmul.f32 %v232_v38, %v227_v58 }
  0xd6   :  { %276 = vperm.xlu1 %386, %v53_v41   ;;  %v162_v41 = vrot.slane %v51_v30, %v161_v21 }
  0xd9   :  { %v257_v1 = vpop.permute.xlu1 %256 }
  0xda   :  { %v263_v16 = vmul.f32 %v605_v33, %v257_v1 }
  0xde   :  { %v287_v8 = vpop.permute.xlu1 %286 }
  0xdf   :  { %v293_v22 = vmul.f32 %v292_v43, %v287_v8  ;;  %v192_v43 = vrot.slane %v51_v30, %v191_v27  ;;  %v282_v27 = vrot.slane %v51_v30, %v281_v39 }
 0x11c   :  { %v92_v53 = vpop.permute.xlu0 %91 }
 0x11d   :  { %v94_v55 = vadd.f32 %v92_v53, %v82_v51 }
 0x11f   :  { %v114_v56 = vadd.f32 %v113_v54, %v94_v55 }
 0x121   :  { %v122_v57 = vpop.permute.xlu0 %121 }
 0x122   :  { %v124_v60 = vadd.f32 %v122_v57, %v114_v56 }
 0x124   :  { %v144_v61 = vadd.f32 %v143_v59, %v124_v60 }
 0x125   :  { %v152_v62 = vpop.permute.xlu0 %151 }
 0x126   :  { %v154_v0 = vadd.f32 %v152_v62, %v144_v61 }
 0x128   :  { %v174_v2 = vadd.f32 %v173_v63, %v154_v0 }
 0x129   :  { %v182_v3 = vpop.permute.xlu0 %181 }
 0x12a   :  { %v184_v5 = vadd.f32 %v182_v3, %v174_v2 }
 0x12b   :  { %v272_v18 = vpop.permute.xlu1 %271 }
 0x12c   :  { %v204_v6 = vadd.f32 %v203_v4, %v184_v5 }
 0x12d   :  { %v212_v7 = vpop.permute.xlu0 %211 }
 0x12e   :  { %v214_v10 = vadd.f32 %v212_v7, %v204_v6 }
 0x130   :  { %v234_v13 = vadd.f32 %v233_v9, %v214_v10 }
 0x131   :  { %v242_v14 = vpop.permute.xlu0 %241 }
 0x132   :  { %v244_v17 = vadd.f32 %v242_v14, %v234_v13 }
 0x134   :  { %v264_v20 = vadd.f32 %v263_v16, %v244_v17 }
 0x135   :  { %v302_v24 = vpop.permute.xlu0 %301 }
 0x136   :  { %v274_v23 = vadd.f32 %v272_v18, %v264_v20 }
 0x138   :  { %v294_v25 = vadd.f32 %v293_v22, %v274_v23 }
 0x13a   :  { %v304_v26 = vadd.f32 %v302_v24, %v294_v25 }
 0x13c   :  { %308 = vrot.lane.b32.xlu0 %v304_v26, %s495_s2  ;;  %v65_v29 = vpop.permute.xlu1 %64 }
 0x13d   :  { %v71_v33 = vmul.f32 %v70_v31, %v65_v29 }
 0x141   :  { %v97_v32 = vpop.permute.xlu1 %96 }
 0x142   :  { %v103_v38 = vmul.f32 %v102_v35, %v97_v32 }
 0x146   :  { %v60_v36 = vpop.permute.xlu0 %59  ;;  %v157_v37 = vpop.permute.xlu1 %156 }
 0x147   :  { %v72_v40 = vadd.f32 %v71_v33, %v60_v36  ;;  %v163_v46 = vmul.f32 %v162_v41, %v157_v37 }
 0x149   :  { %v104_v45 = vadd.f32 %v103_v38, %v72_v40 }
 0x14b   :  { %v127_v44 = vpop.permute.xlu0 %126  ;;  %v187_v12 = vpop.permute.xlu1 %186 }
 0x14c   :  { %v133_v47 = vmul.f32 %v132_v42, %v127_v44  ;;  %v193_v49 = vmul.f32 %v192_v43, %v187_v12 }
 0x14e   :  { %v134_v48 = vadd.f32 %v133_v47, %v104_v45 }
 0x150   :  { %v164_v21 = vadd.f32 %v163_v46, %v134_v48  ;;  %v247_v51 = vpop.permute.xlu1 %246  ;;  %v217_v52 = vpop.permute.xlu0 %216 }
 0x151   :  { %v223_v19 = vmul.f32 %v222_v15, %v217_v52  ;;  %v253_v54 = vmul.f32 %v252_v50, %v247_v51 }
 0x152   :  { %v194_v53 = vadd.f32 %v193_v49, %v164_v21 }
 0x154   :  { %v224_v55 = vadd.f32 %v223_v19, %v194_v53 }
 0x155   :  { %v277_v56 = vpop.permute.xlu1 %276 }
 0x156   :  { %v283_v57 = vmul.f32 %v282_v27, %v277_v56  ;;  %v254_v58 = vadd.f32 %v253_v54, %v224_v55 }
 0x158   :  { %v284_v34 = vadd.f32 %v283_v57, %v254_v58 }
 0x15a   :  { %306 = vst.msk [vmem:[#allocation7] sm:$0xff] %vm305_vm0, %v284_v34 }
 0x15b   :  { %443 = shalt.err (!%p440_p6)
}
 0x15c   :  { %s444_s11 = scalar_lea.hbm %s685_s6, 128 }
 0x15d   :  { %p445_p7 = scmp.ne.s32.totalorder %s685_s6, %s444_s11  ;;  %p448_p8 = scmp.lt.u32.totalorder %s444_s11, %s685_s6 }
 0x15f   :  { %p450_p9 = pnand %p448_p8, %p445_p7 }
 0x161   :  { %453 = shalt.err (!%p450_p9)
}
 0x162   :  { %328 = dma.vmem_to_hbm [thread:$0]  %s326_s30, 128, %s685_s6, [#allocation4]   ;;  %vm317_vm1 = vcmask 113664  }
 0x163   :  { %s497_s18 = smov [#allocation8]  }
 0x164   :  { %s335_s19 = sshll.u32 %s497_s18, 4  ;;  %s336_s19 = int_to_ptr.vmem [resolvable:$true] %s335_s19 }
 0x165   :  { %s454_s20 = scalar_lea.vmem %s336_s19, 128  ;;  %p459_p11 = scmp.lt.s32.totalorder %s336_s19, %s336_s19 }
 0x166   :  { %p455_p10 = scmp.ne.s32.totalorder %s336_s19, %s454_s20  ;;  %p460_p12 = scmp.lt.s32.totalorder %s454_s20, %s454_s20 }
 0x168   :  { %p461_p13 = por %p460_p12, %p459_p11 }
 0x16a   :  { %p462_p0 = pnand %p461_p13, %p455_p10 }
 0x1ae   :  { %v309_v11 = vpop.permute.xlu0 %308 }
 0x1af   :  { %v311_v28 = vadd.f32 %v309_v11, %v284_v34 }
 0x1b1   :  { %v312_v39 = vmax.f32 %v311_v28, 0.0 }
 0x1b3   :  { %314 = vrot.lane.b32.xlu1 %v312_v39, %s494_s4 }
 0x225   :  { %v315_v59 = vpop.permute.xlu1 %314 }
 0x226   :  { %318 = vst.msk [vmem:[#allocation8] sm:$0xff] %vm317_vm1, %v315_v59 }
 0x227   :  { %465 = shalt.err (!%p462_p0)
}
 0x228   :  { %s466_s22 = scalar_lea.hbm %s686_s7, 128 }
 0x229   :  { %p467_p1 = scmp.ne.s32.totalorder %s686_s7, %s466_s22  ;;  %p470_p2 = scmp.lt.u32.totalorder %s466_s22, %s686_s7 }
 0x22b   :  { %p472_p3 = pnand %p470_p2, %p467_p1 }
 0x22d   :  { %475 = shalt.err (!%p472_p3)
}
 0x22e   :  { %338 = dma.vmem_to_hbm [thread:$0]  %s336_s19, 128, %s686_s7, [#allocation9]  }
 0x22f   :  { %480 = dma.done.wait [#allocation4], 128  }
 0x230   :  { %481 = vsyncadd [#allocation4], 4294967168 }
 0x231   :  { %482 = dma.done.wait [#allocation9], 128  }
 0x232   :  { %483 = vsyncadd [#allocation9], 4294967168 }
 0x233   :  { %345 = vsyncpa [#allocation3], 1 }
 0x234   :  { %346 = vsyncpa [#allocation6], 1 }
 0x235   :  { %347 = vsyncpa [#allocation4], 1 }
 0x236   :  { %348 = vsyncpa [#allocation9], 1 }

</bundles_post_ra>
